<compile_context>
chip_gen: v5e
topology: v5e:2x2
jax: 0.10.0
libtpu: 0.0.40
codegen_flags: <defaults>
</compile_context>

<pallas_src>
import functools

import jax
import jax.numpy as jnp
import numpy as np
from jax import lax
from jax.experimental import pallas as pl
from jax.experimental.pallas import tpu as pltpu

# ---------------------------------------------------------------------------
# "Config" for this synthetic instantiation (level = 0)
# ---------------------------------------------------------------------------
LEVEL = 0
VECTOR_SIZES = (16, 32)      # vector_sizes[level] = 16 (out), vector_sizes[level+1] = 32 (hidden)
SEQUENCE_LENGTHS = (8,)      # sequence_lengths[level] = 8
DROP_RATE = 0.1              # unused at inference (eval mode)
LN_EPS = 1e-5


# ---------------------------------------------------------------------------
# Pallas kernel: unrolled recurrence, then one LayerNorm + one projection
# ---------------------------------------------------------------------------
def _decompressor_kernel(
    x_ref,        # (B, D)        initial input
    wih_ref,      # (D, 4D)       W_ih^T   (PyTorch gate order i, f, g, o)
    wcomb_ref,    # (D, 4D)       W_ih^T + W_hh^T  (valid for t >= 1: last_input == h)
    b_ref,        # (1, 4D)       b_ih + b_hh
    gamma_ref,    # (1, D)        LayerNorm weight
    beta_ref,     # (1, D)        LayerNorm bias
    wout_ref,     # (D, D_out)    out_projection.weight^T
    bout_ref,     # (1, D_out)    out_projection.bias
    out_ref,      # (B, S*D_out)  lane-dense output slab
    *,
    seq_len,
):
    B, D = x_ref.shape

    # Hoisted broadcasts / loads (JAX does not CSE broadcast_in_dim in loops).
    bias = jnp.broadcast_to(b_ref[...], (B, 4 * D))
    wcomb = wcomb_ref[...]

    def gate_acts(pre):
        i_g = jax.nn.sigmoid(pre[:, 0 * D:1 * D])
        f_g = jax.nn.sigmoid(pre[:, 1 * D:2 * D])
        g_g = jnp.tanh(pre[:, 2 * D:3 * D])
        o_g = jax.nn.sigmoid(pre[:, 3 * D:4 * D])
        return i_g, f_g, g_g, o_g

    # ---- step 0 (peeled): h0 = c0 = 0 -> only W_ih term, c = i*g ----------
    pre0 = jnp.dot(x_ref[...], wih_ref[...],
                   preferred_element_type=jnp.float32) + bias
    i_g, f_g, g_g, o_g = gate_acts(pre0)
    c = i_g * g_g
    h = o_g * jnp.tanh(c)
    hs = [h]

    # ---- steps 1..S-1: last_input == h -> single matmul with W_comb -------
    for _ in range(1, seq_len):
        pre = jnp.dot(h, wcomb, preferred_element_type=jnp.float32) + bias
        i_g, f_g, g_g, o_g = gate_acts(pre)
        c = f_g * c + i_g * g_g
        h = o_g * jnp.tanh(c)
        hs.append(h)

    # ---- hoisted LayerNorm over all (t, b) rows + single projection -------
    hcat = jnp.concatenate(hs, axis=0)                         # (S*B, D), t-major
    mean = jnp.mean(hcat, axis=-1, keepdims=True)
    var = jnp.mean((hcat - mean) ** 2, axis=-1, keepdims=True)
    hn = (hcat - mean) * lax.rsqrt(var + LN_EPS)
    hn = hn * gamma_ref[...] + beta_ref[...]

    # One MXU matmul instead of S tiny ones: (S*B, D) @ (D, D_out)
    proj = jnp.dot(hn, wout_ref[...],
                   preferred_element_type=jnp.float32) + bout_ref[...]  # (S*B, D_out)

    # Single lane-dense store: out[b, t*D_out:(t+1)*D_out] = proj[t*B + b, :]
    out_ref[...] = jnp.concatenate(
        [proj[t * B:(t + 1) * B, :] for t in range(seq_len)], axis=1)


def decompressor_forward(x, params, seq_len):
    """x: (B, D) float32 -> (B, S, D_out) float32."""
    B, D = x.shape
    D_out = params["w_out_t"].shape[1]

    # Combined recurrence weight (valid because last_input == h for t >= 1).
    w_comb = params["w_ih_t"] + params["w_hh_t"]

    vmem_spec = pl.BlockSpec(memory_space=pltpu.MemorySpace.VMEM)

    out_flat = pl.pallas_call(
        functools.partial(_decompressor_kernel, seq_len=seq_len),
        out_shape=jax.ShapeDtypeStruct((B, seq_len * D_out), jnp.float32),
        in_specs=[vmem_spec] * 8,
        out_specs=vmem_spec,
    )(
        x,
        params["w_ih_t"],
        w_comb,
        params["b_gates"],
        params["ln_gamma"],
        params["ln_beta"],
        params["w_out_t"],
        params["b_out"],
    )
    # (B, S*D_out) -> (B, S, D_out): contiguous reshape, no transpose needed.
    return out_flat.reshape(B, seq_len, D_out)


# ---------------------------------------------------------------------------
# Pure-JAX reference (mirrors the PyTorch forward) for a silent sanity check.
# ---------------------------------------------------------------------------
def decompressor_reference(x, params, seq_len):
    B, D = x.shape
    w_ih_t, w_hh_t = params["w_ih_t"], params["w_hh_t"]
    b = params["b_gates"]
    gamma, beta = params["ln_gamma"], params["ln_beta"]
    w_out_t, b_out = params["w_out_t"], params["b_out"]

    h = jnp.zeros((B, D), jnp.float32)
    c = jnp.zeros((B, D), jnp.float32)
    last = x
    outs = []
    for _ in range(seq_len):
        gates = last @ w_ih_t + h @ w_hh_t + b
        i_g = jax.nn.sigmoid(gates[:, 0 * D:1 * D])
        f_g = jax.nn.sigmoid(gates[:, 1 * D:2 * D])
        g_g = jnp.tanh(gates[:, 2 * D:3 * D])
        o_g = jax.nn.sigmoid(gates[:, 3 * D:4 * D])
        c = f_g * c + i_g * g_g
        h = o_g * jnp.tanh(c)
        outs.append(h)
        last = h
    seq = jnp.stack(outs, axis=0).transpose(1, 0, 2)          # (B, S, D)
    mean = seq.mean(-1, keepdims=True)
    var = ((seq - mean) ** 2).mean(-1, keepdims=True)
    seq = (seq - mean) * lax.rsqrt(var + LN_EPS) * gamma + beta
    return seq @ w_out_t + b_out


# ---------------------------------------------------------------------------
# Deterministic parameter construction (PyTorch-style uniform(-1/sqrt(D), ...))
# ---------------------------------------------------------------------------
def make_params(key, d_in, d_out):
    ks = jax.random.split(key, 8)
    bound = 1.0 / np.sqrt(d_in)

    def u(k, shape):
        return jax.random.uniform(k, shape, jnp.float32, -bound, bound)

    w_ih = u(ks[0], (4 * d_in, d_in))     # LSTM weight_ih_l0
    w_hh = u(ks[1], (4 * d_in, d_in))     # LSTM weight_hh_l0
    b_ih = u(ks[2], (4 * d_in,))
    b_hh = u(ks[3], (4 * d_in,))
    w_out = u(ks[4], (d_out, d_in))       # nn.Linear(d_in, d_out).weight
    b_out = u(ks[5], (d_out,))

    return {
        "w_ih_t": w_ih.T,                                  # (D, 4D)
        "w_hh_t": w_hh.T,                                  # (D, 4D)
        "b_gates": (b_ih + b_hh)[None, :],                 # (1, 4D)
        "ln_gamma": jnp.ones((1, d_in), jnp.float32),      # LayerNorm.weight
        "ln_beta": jnp.zeros((1, d_in), jnp.float32),      # LayerNorm.bias
        "w_out_t": w_out.T,                                # (D, D_out)
        "b_out": b_out[None, :],                           # (1, D_out)
    }


if __name__ == "__main__":
    B = 2
    D = VECTOR_SIZES[LEVEL + 1]          # 32
    D_OUT = VECTOR_SIZES[LEVEL]          # 16
    S = SEQUENCE_LENGTHS[LEVEL]          # 8

    key = jax.random.PRNGKey(0)
    k_x, k_p = jax.random.split(key)
    x = jax.random.normal(k_x, (B, D), jnp.float32)
    params = make_params(k_p, D, D_OUT)

    fwd = jax.jit(functools.partial(decompressor_forward, seq_len=S))
    out = fwd(x, params)
    out = jax.block_until_ready(out)

    ref = decompressor_reference(x, params, S)
    assert out.shape == (B, S, D_OUT)
    np.testing.assert_allclose(np.asarray(out), np.asarray(ref), rtol=2e-3, atol=2e-3)

    print("KERNEL_OK")
</pallas_src>

<mosaic_0001>
module attributes {stable_mosaic.version = 11 : i64} {
  func.func @_decompressor_kernel(%arg0: memref<2x32xf32, #tpu.memory_space<vmem>>, %arg1: memref<32x128xf32, #tpu.memory_space<vmem>>, %arg2: memref<32x128xf32, #tpu.memory_space<vmem>>, %arg3: memref<1x128xf32, #tpu.memory_space<vmem>>, %arg4: memref<1x32xf32, #tpu.memory_space<vmem>>, %arg5: memref<1x32xf32, #tpu.memory_space<vmem>>, %arg6: memref<32x16xf32, #tpu.memory_space<vmem>>, %arg7: memref<1x16xf32, #tpu.memory_space<vmem>>, %arg8: memref<2x128xf32, #tpu.memory_space<vmem>>) attributes {dimension_semantics = [], scalar_prefetch = 0 : i64, scratch_operands = 0 : i64, tpu.core_type = #tpu.core_type<tc>} {
    %c0 = arith.constant 0 : index
    %c0_0 = arith.constant 0 : index
    %0 = vector.load %arg3[%c0, %c0_0] : memref<1x128xf32, #tpu.memory_space<vmem>>, vector<1x128xf32>
    %1 = vector.shape_cast %0 : vector<1x128xf32> to vector<1x128xf32>
    %2 = vector.broadcast %1 : vector<1x128xf32> to vector<2x128xf32>
    %c0_1 = arith.constant 0 : index
    %c0_2 = arith.constant 0 : index
    %3 = vector.load %arg2[%c0_1, %c0_2] : memref<32x128xf32, #tpu.memory_space<vmem>>, vector<32x128xf32>
    %c0_3 = arith.constant 0 : index
    %c0_4 = arith.constant 0 : index
    %4 = vector.load %arg0[%c0_3, %c0_4] : memref<2x32xf32, #tpu.memory_space<vmem>>, vector<2x32xf32>
    %c0_5 = arith.constant 0 : index
    %c0_6 = arith.constant 0 : index
    %5 = vector.load %arg1[%c0_5, %c0_6] : memref<32x128xf32, #tpu.memory_space<vmem>>, vector<32x128xf32>
    %cst = arith.constant dense<0.000000e+00> : vector<2x128xf32>
    %6 = tpu.matmul %4, %5, %cst {dimension_numbers = #tpu.dot_dimension_numbers<[1], [0], [0], [1], [0, 0, 1, 1], [], []>} : vector<2x32xf32>, vector<32x128xf32>, vector<2x128xf32> -> vector<2x128xf32>
    %7 = arith.addf %6, %2 : vector<2x128xf32>
    %8 = vector.extract_strided_slice %7 {offsets = [0, 0], sizes = [2, 32], strides = [1, 1]} : vector<2x128xf32> to vector<2x32xf32>
    %9 = arith.negf %8 : vector<2x32xf32>
    %10 = math.exp %9 : vector<2x32xf32>
    %cst_7 = arith.constant 1.000000e+00 : f32
    %11 = vector.broadcast %cst_7 : f32 to vector<2x32xf32>
    %12 = arith.addf %11, %10 : vector<2x32xf32>
    %13 = arith.divf %11, %12 : vector<2x32xf32>
    %14 = vector.extract_strided_slice %7 {offsets = [0, 64], sizes = [2, 32], strides = [1, 1]} : vector<2x128xf32> to vector<2x32xf32>
    %15 = math.tanh %14 : vector<2x32xf32>
    %16 = vector.extract_strided_slice %7 {offsets = [0, 96], sizes = [2, 32], strides = [1, 1]} : vector<2x128xf32> to vector<2x32xf32>
    %17 = arith.negf %16 : vector<2x32xf32>
    %18 = math.exp %17 : vector<2x32xf32>
    %cst_8 = arith.constant 1.000000e+00 : f32
    %19 = vector.broadcast %cst_8 : f32 to vector<2x32xf32>
    %20 = arith.addf %19, %18 : vector<2x32xf32>
    %21 = arith.divf %19, %20 : vector<2x32xf32>
    %22 = arith.mulf %13, %15 : vector<2x32xf32>
    %23 = math.tanh %22 : vector<2x32xf32>
    %24 = arith.mulf %21, %23 : vector<2x32xf32>
    %cst_9 = arith.constant dense<0.000000e+00> : vector<2x128xf32>
    %25 = tpu.matmul %24, %3, %cst_9 {dimension_numbers = #tpu.dot_dimension_numbers<[1], [0], [0], [1], [0, 0, 1, 1], [], []>} : vector<2x32xf32>, vector<32x128xf32>, vector<2x128xf32> -> vector<2x128xf32>
    %26 = arith.addf %25, %2 : vector<2x128xf32>
    %27 = vector.extract_strided_slice %26 {offsets = [0, 0], sizes = [2, 32], strides = [1, 1]} : vector<2x128xf32> to vector<2x32xf32>
    %28 = arith.negf %27 : vector<2x32xf32>
    %29 = math.exp %28 : vector<2x32xf32>
    %cst_10 = arith.constant 1.000000e+00 : f32
    %30 = vector.broadcast %cst_10 : f32 to vector<2x32xf32>
    %31 = arith.addf %30, %29 : vector<2x32xf32>
    %32 = arith.divf %30, %31 : vector<2x32xf32>
    %33 = vector.extract_strided_slice %26 {offsets = [0, 32], sizes = [2, 32], strides = [1, 1]} : vector<2x128xf32> to vector<2x32xf32>
    %34 = arith.negf %33 : vector<2x32xf32>
    %35 = math.exp %34 : vector<2x32xf32>
    %cst_11 = arith.constant 1.000000e+00 : f32
    %36 = vector.broadcast %cst_11 : f32 to vector<2x32xf32>
    %37 = arith.addf %36, %35 : vector<2x32xf32>
    %38 = arith.divf %36, %37 : vector<2x32xf32>
    %39 = vector.extract_strided_slice %26 {offsets = [0, 64], sizes = [2, 32], strides = [1, 1]} : vector<2x128xf32> to vector<2x32xf32>
    %40 = math.tanh %39 : vector<2x32xf32>
    %41 = vector.extract_strided_slice %26 {offsets = [0, 96], sizes = [2, 32], strides = [1, 1]} : vector<2x128xf32> to vector<2x32xf32>
    %42 = arith.negf %41 : vector<2x32xf32>
    %43 = math.exp %42 : vector<2x32xf32>
    %cst_12 = arith.constant 1.000000e+00 : f32
    %44 = vector.broadcast %cst_12 : f32 to vector<2x32xf32>
    %45 = arith.addf %44, %43 : vector<2x32xf32>
    %46 = arith.divf %44, %45 : vector<2x32xf32>
    %47 = arith.mulf %38, %22 : vector<2x32xf32>
    %48 = arith.mulf %32, %40 : vector<2x32xf32>
    %49 = arith.addf %47, %48 : vector<2x32xf32>
    %50 = math.tanh %49 : vector<2x32xf32>
    %51 = arith.mulf %46, %50 : vector<2x32xf32>
    %cst_13 = arith.constant dense<0.000000e+00> : vector<2x128xf32>
    %52 = tpu.matmul %51, %3, %cst_13 {dimension_numbers = #tpu.dot_dimension_numbers<[1], [0], [0], [1], [0, 0, 1, 1], [], []>} : vector<2x32xf32>, vector<32x128xf32>, vector<2x128xf32> -> vector<2x128xf32>
    %53 = arith.addf %52, %2 : vector<2x128xf32>
    %54 = vector.extract_strided_slice %53 {offsets = [0, 0], sizes = [2, 32], strides = [1, 1]} : vector<2x128xf32> to vector<2x32xf32>
    %55 = arith.negf %54 : vector<2x32xf32>
    %56 = math.exp %55 : vector<2x32xf32>
    %cst_14 = arith.constant 1.000000e+00 : f32
    %57 = vector.broadcast %cst_14 : f32 to vector<2x32xf32>
    %58 = arith.addf %57, %56 : vector<2x32xf32>
    %59 = arith.divf %57, %58 : vector<2x32xf32>
    %60 = vector.extract_strided_slice %53 {offsets = [0, 32], sizes = [2, 32], strides = [1, 1]} : vector<2x128xf32> to vector<2x32xf32>
    %61 = arith.negf %60 : vector<2x32xf32>
    %62 = math.exp %61 : vector<2x32xf32>
    %cst_15 = arith.constant 1.000000e+00 : f32
    %63 = vector.broadcast %cst_15 : f32 to vector<2x32xf32>
    %64 = arith.addf %63, %62 : vector<2x32xf32>
    %65 = arith.divf %63, %64 : vector<2x32xf32>
    %66 = vector.extract_strided_slice %53 {offsets = [0, 64], sizes = [2, 32], strides = [1, 1]} : vector<2x128xf32> to vector<2x32xf32>
    %67 = math.tanh %66 : vector<2x32xf32>
    %68 = vector.extract_strided_slice %53 {offsets = [0, 96], sizes = [2, 32], strides = [1, 1]} : vector<2x128xf32> to vector<2x32xf32>
    %69 = arith.negf %68 : vector<2x32xf32>
    %70 = math.exp %69 : vector<2x32xf32>
    %cst_16 = arith.constant 1.000000e+00 : f32
    %71 = vector.broadcast %cst_16 : f32 to vector<2x32xf32>
    %72 = arith.addf %71, %70 : vector<2x32xf32>
    %73 = arith.divf %71, %72 : vector<2x32xf32>
    %74 = arith.mulf %65, %49 : vector<2x32xf32>
    %75 = arith.mulf %59, %67 : vector<2x32xf32>
    %76 = arith.addf %74, %75 : vector<2x32xf32>
    %77 = math.tanh %76 : vector<2x32xf32>
    %78 = arith.mulf %73, %77 : vector<2x32xf32>
    %cst_17 = arith.constant dense<0.000000e+00> : vector<2x128xf32>
    %79 = tpu.matmul %78, %3, %cst_17 {dimension_numbers = #tpu.dot_dimension_numbers<[1], [0], [0], [1], [0, 0, 1, 1], [], []>} : vector<2x32xf32>, vector<32x128xf32>, vector<2x128xf32> -> vector<2x128xf32>
    %80 = arith.addf %79, %2 : vector<2x128xf32>
    %81 = vector.extract_strided_slice %80 {offsets = [0, 0], sizes = [2, 32], strides = [1, 1]} : vector<2x128xf32> to vector<2x32xf32>
    %82 = arith.negf %81 : vector<2x32xf32>
    %83 = math.exp %82 : vector<2x32xf32>
    %cst_18 = arith.constant 1.000000e+00 : f32
    %84 = vector.broadcast %cst_18 : f32 to vector<2x32xf32>
    %85 = arith.addf %84, %83 : vector<2x32xf32>
    %86 = arith.divf %84, %85 : vector<2x32xf32>
    %87 = vector.extract_strided_slice %80 {offsets = [0, 32], sizes = [2, 32], strides = [1, 1]} : vector<2x128xf32> to vector<2x32xf32>
    %88 = arith.negf %87 : vector<2x32xf32>
    %89 = math.exp %88 : vector<2x32xf32>
    %cst_19 = arith.constant 1.000000e+00 : f32
    %90 = vector.broadcast %cst_19 : f32 to vector<2x32xf32>
    %91 = arith.addf %90, %89 : vector<2x32xf32>
    %92 = arith.divf %90, %91 : vector<2x32xf32>
    %93 = vector.extract_strided_slice %80 {offsets = [0, 64], sizes = [2, 32], strides = [1, 1]} : vector<2x128xf32> to vector<2x32xf32>
    %94 = math.tanh %93 : vector<2x32xf32>
    %95 = vector.extract_strided_slice %80 {offsets = [0, 96], sizes = [2, 32], strides = [1, 1]} : vector<2x128xf32> to vector<2x32xf32>
    %96 = arith.negf %95 : vector<2x32xf32>
    %97 = math.exp %96 : vector<2x32xf32>
    %cst_20 = arith.constant 1.000000e+00 : f32
    %98 = vector.broadcast %cst_20 : f32 to vector<2x32xf32>
    %99 = arith.addf %98, %97 : vector<2x32xf32>
    %100 = arith.divf %98, %99 : vector<2x32xf32>
    %101 = arith.mulf %92, %76 : vector<2x32xf32>
    %102 = arith.mulf %86, %94 : vector<2x32xf32>
    %103 = arith.addf %101, %102 : vector<2x32xf32>
    %104 = math.tanh %103 : vector<2x32xf32>
    %105 = arith.mulf %100, %104 : vector<2x32xf32>
    %cst_21 = arith.constant dense<0.000000e+00> : vector<2x128xf32>
    %106 = tpu.matmul %105, %3, %cst_21 {dimension_numbers = #tpu.dot_dimension_numbers<[1], [0], [0], [1], [0, 0, 1, 1], [], []>} : vector<2x32xf32>, vector<32x128xf32>, vector<2x128xf32> -> vector<2x128xf32>
    %107 = arith.addf %106, %2 : vector<2x128xf32>
    %108 = vector.extract_strided_slice %107 {offsets = [0, 0], sizes = [2, 32], strides = [1, 1]} : vector<2x128xf32> to vector<2x32xf32>
    %109 = arith.negf %108 : vector<2x32xf32>
    %110 = math.exp %109 : vector<2x32xf32>
    %cst_22 = arith.constant 1.000000e+00 : f32
    %111 = vector.broadcast %cst_22 : f32 to vector<2x32xf32>
    %112 = arith.addf %111, %110 : vector<2x32xf32>
    %113 = arith.divf %111, %112 : vector<2x32xf32>
    %114 = vector.extract_strided_slice %107 {offsets = [0, 32], sizes = [2, 32], strides = [1, 1]} : vector<2x128xf32> to vector<2x32xf32>
    %115 = arith.negf %114 : vector<2x32xf32>
    %116 = math.exp %115 : vector<2x32xf32>
    %cst_23 = arith.constant 1.000000e+00 : f32
    %117 = vector.broadcast %cst_23 : f32 to vector<2x32xf32>
    %118 = arith.addf %117, %116 : vector<2x32xf32>
    %119 = arith.divf %117, %118 : vector<2x32xf32>
    %120 = vector.extract_strided_slice %107 {offsets = [0, 64], sizes = [2, 32], strides = [1, 1]} : vector<2x128xf32> to vector<2x32xf32>
    %121 = math.tanh %120 : vector<2x32xf32>
    %122 = vector.extract_strided_slice %107 {offsets = [0, 96], sizes = [2, 32], strides = [1, 1]} : vector<2x128xf32> to vector<2x32xf32>
    %123 = arith.negf %122 : vector<2x32xf32>
    %124 = math.exp %123 : vector<2x32xf32>
    %cst_24 = arith.constant 1.000000e+00 : f32
    %125 = vector.broadcast %cst_24 : f32 to vector<2x32xf32>
    %126 = arith.addf %125, %124 : vector<2x32xf32>
    %127 = arith.divf %125, %126 : vector<2x32xf32>
    %128 = arith.mulf %119, %103 : vector<2x32xf32>
    %129 = arith.mulf %113, %121 : vector<2x32xf32>
    %130 = arith.addf %128, %129 : vector<2x32xf32>
    %131 = math.tanh %130 : vector<2x32xf32>
    %132 = arith.mulf %127, %131 : vector<2x32xf32>
    %cst_25 = arith.constant dense<0.000000e+00> : vector<2x128xf32>
    %133 = tpu.matmul %132, %3, %cst_25 {dimension_numbers = #tpu.dot_dimension_numbers<[1], [0], [0], [1], [0, 0, 1, 1], [], []>} : vector<2x32xf32>, vector<32x128xf32>, vector<2x128xf32> -> vector<2x128xf32>
    %134 = arith.addf %133, %2 : vector<2x128xf32>
    %135 = vector.extract_strided_slice %134 {offsets = [0, 0], sizes = [2, 32], strides = [1, 1]} : vector<2x128xf32> to vector<2x32xf32>
    %136 = arith.negf %135 : vector<2x32xf32>
    %137 = math.exp %136 : vector<2x32xf32>
    %cst_26 = arith.constant 1.000000e+00 : f32
    %138 = vector.broadcast %cst_26 : f32 to vector<2x32xf32>
    %139 = arith.addf %138, %137 : vector<2x32xf32>
    %140 = arith.divf %138, %139 : vector<2x32xf32>
    %141 = vector.extract_strided_slice %134 {offsets = [0, 32], sizes = [2, 32], strides = [1, 1]} : vector<2x128xf32> to vector<2x32xf32>
    %142 = arith.negf %141 : vector<2x32xf32>
    %143 = math.exp %142 : vector<2x32xf32>
    %cst_27 = arith.constant 1.000000e+00 : f32
    %144 = vector.broadcast %cst_27 : f32 to vector<2x32xf32>
    %145 = arith.addf %144, %143 : vector<2x32xf32>
    %146 = arith.divf %144, %145 : vector<2x32xf32>
    %147 = vector.extract_strided_slice %134 {offsets = [0, 64], sizes = [2, 32], strides = [1, 1]} : vector<2x128xf32> to vector<2x32xf32>
    %148 = math.tanh %147 : vector<2x32xf32>
    %149 = vector.extract_strided_slice %134 {offsets = [0, 96], sizes = [2, 32], strides = [1, 1]} : vector<2x128xf32> to vector<2x32xf32>
    %150 = arith.negf %149 : vector<2x32xf32>
    %151 = math.exp %150 : vector<2x32xf32>
    %cst_28 = arith.constant 1.000000e+00 : f32
    %152 = vector.broadcast %cst_28 : f32 to vector<2x32xf32>
    %153 = arith.addf %152, %151 : vector<2x32xf32>
    %154 = arith.divf %152, %153 : vector<2x32xf32>
    %155 = arith.mulf %146, %130 : vector<2x32xf32>
    %156 = arith.mulf %140, %148 : vector<2x32xf32>
    %157 = arith.addf %155, %156 : vector<2x32xf32>
    %158 = math.tanh %157 : vector<2x32xf32>
    %159 = arith.mulf %154, %158 : vector<2x32xf32>
    %cst_29 = arith.constant dense<0.000000e+00> : vector<2x128xf32>
    %160 = tpu.matmul %159, %3, %cst_29 {dimension_numbers = #tpu.dot_dimension_numbers<[1], [0], [0], [1], [0, 0, 1, 1], [], []>} : vector<2x32xf32>, vector<32x128xf32>, vector<2x128xf32> -> vector<2x128xf32>
    %161 = arith.addf %160, %2 : vector<2x128xf32>
    %162 = vector.extract_strided_slice %161 {offsets = [0, 0], sizes = [2, 32], strides = [1, 1]} : vector<2x128xf32> to vector<2x32xf32>
    %163 = arith.negf %162 : vector<2x32xf32>
    %164 = math.exp %163 : vector<2x32xf32>
    %cst_30 = arith.constant 1.000000e+00 : f32
    %165 = vector.broadcast %cst_30 : f32 to vector<2x32xf32>
    %166 = arith.addf %165, %164 : vector<2x32xf32>
    %167 = arith.divf %165, %166 : vector<2x32xf32>
    %168 = vector.extract_strided_slice %161 {offsets = [0, 32], sizes = [2, 32], strides = [1, 1]} : vector<2x128xf32> to vector<2x32xf32>
    %169 = arith.negf %168 : vector<2x32xf32>
    %170 = math.exp %169 : vector<2x32xf32>
    %cst_31 = arith.constant 1.000000e+00 : f32
    %171 = vector.broadcast %cst_31 : f32 to vector<2x32xf32>
    %172 = arith.addf %171, %170 : vector<2x32xf32>
    %173 = arith.divf %171, %172 : vector<2x32xf32>
    %174 = vector.extract_strided_slice %161 {offsets = [0, 64], sizes = [2, 32], strides = [1, 1]} : vector<2x128xf32> to vector<2x32xf32>
    %175 = math.tanh %174 : vector<2x32xf32>
    %176 = vector.extract_strided_slice %161 {offsets = [0, 96], sizes = [2, 32], strides = [1, 1]} : vector<2x128xf32> to vector<2x32xf32>
    %177 = arith.negf %176 : vector<2x32xf32>
    %178 = math.exp %177 : vector<2x32xf32>
    %cst_32 = arith.constant 1.000000e+00 : f32
    %179 = vector.broadcast %cst_32 : f32 to vector<2x32xf32>
    %180 = arith.addf %179, %178 : vector<2x32xf32>
    %181 = arith.divf %179, %180 : vector<2x32xf32>
    %182 = arith.mulf %173, %157 : vector<2x32xf32>
    %183 = arith.mulf %167, %175 : vector<2x32xf32>
    %184 = arith.addf %182, %183 : vector<2x32xf32>
    %185 = math.tanh %184 : vector<2x32xf32>
    %186 = arith.mulf %181, %185 : vector<2x32xf32>
    %cst_33 = arith.constant dense<0.000000e+00> : vector<2x128xf32>
    %187 = tpu.matmul %186, %3, %cst_33 {dimension_numbers = #tpu.dot_dimension_numbers<[1], [0], [0], [1], [0, 0, 1, 1], [], []>} : vector<2x32xf32>, vector<32x128xf32>, vector<2x128xf32> -> vector<2x128xf32>
    %188 = arith.addf %187, %2 : vector<2x128xf32>
    %189 = vector.extract_strided_slice %188 {offsets = [0, 0], sizes = [2, 32], strides = [1, 1]} : vector<2x128xf32> to vector<2x32xf32>
    %190 = arith.negf %189 : vector<2x32xf32>
    %191 = math.exp %190 : vector<2x32xf32>
    %cst_34 = arith.constant 1.000000e+00 : f32
    %192 = vector.broadcast %cst_34 : f32 to vector<2x32xf32>
    %193 = arith.addf %192, %191 : vector<2x32xf32>
    %194 = arith.divf %192, %193 : vector<2x32xf32>
    %195 = vector.extract_strided_slice %188 {offsets = [0, 32], sizes = [2, 32], strides = [1, 1]} : vector<2x128xf32> to vector<2x32xf32>
    %196 = arith.negf %195 : vector<2x32xf32>
    %197 = math.exp %196 : vector<2x32xf32>
    %cst_35 = arith.constant 1.000000e+00 : f32
    %198 = vector.broadcast %cst_35 : f32 to vector<2x32xf32>
    %199 = arith.addf %198, %197 : vector<2x32xf32>
    %200 = arith.divf %198, %199 : vector<2x32xf32>
    %201 = vector.extract_strided_slice %188 {offsets = [0, 64], sizes = [2, 32], strides = [1, 1]} : vector<2x128xf32> to vector<2x32xf32>
    %202 = math.tanh %201 : vector<2x32xf32>
    %203 = vector.extract_strided_slice %188 {offsets = [0, 96], sizes = [2, 32], strides = [1, 1]} : vector<2x128xf32> to vector<2x32xf32>
    %204 = arith.negf %203 : vector<2x32xf32>
    %205 = math.exp %204 : vector<2x32xf32>
    %cst_36 = arith.constant 1.000000e+00 : f32
    %206 = vector.broadcast %cst_36 : f32 to vector<2x32xf32>
    %207 = arith.addf %206, %205 : vector<2x32xf32>
    %208 = arith.divf %206, %207 : vector<2x32xf32>
    %209 = arith.mulf %200, %184 : vector<2x32xf32>
    %210 = arith.mulf %194, %202 : vector<2x32xf32>
    %211 = arith.addf %209, %210 : vector<2x32xf32>
    %212 = math.tanh %211 : vector<2x32xf32>
    %213 = arith.mulf %208, %212 : vector<2x32xf32>
    %214 = tpu.concatenate %24, %51, %78, %105, %132, %159, %186, %213 in 0 : vector<2x32xf32>, vector<2x32xf32>, vector<2x32xf32>, vector<2x32xf32>, vector<2x32xf32>, vector<2x32xf32>, vector<2x32xf32>, vector<2x32xf32> -> vector<16x32xf32>
    %cst_37 = arith.constant dense<0.000000e+00> : vector<16xf32>
    %215 = vector.multi_reduction <add>, %214, %cst_37 [1] : vector<16x32xf32> to vector<16xf32>
    %216 = vector.shape_cast %215 : vector<16xf32> to vector<16x1xf32>
    %cst_38 = arith.constant 3.200000e+01 : f32
    %217 = vector.broadcast %cst_38 : f32 to vector<16x1xf32>
    %218 = arith.divf %216, %217 : vector<16x1xf32>
    %219 = vector.broadcast %218 : vector<16x1xf32> to vector<16x32xf32>
    %220 = arith.subf %214, %219 : vector<16x32xf32>
    %221 = arith.mulf %220, %220 : vector<16x32xf32>
    %cst_39 = arith.constant dense<0.000000e+00> : vector<16xf32>
    %222 = vector.multi_reduction <add>, %221, %cst_39 [1] : vector<16x32xf32> to vector<16xf32>
    %223 = vector.shape_cast %222 : vector<16xf32> to vector<16x1xf32>
    %cst_40 = arith.constant 3.200000e+01 : f32
    %224 = vector.broadcast %cst_40 : f32 to vector<16x1xf32>
    %225 = arith.divf %223, %224 : vector<16x1xf32>
    %226 = vector.broadcast %218 : vector<16x1xf32> to vector<16x32xf32>
    %227 = arith.subf %214, %226 : vector<16x32xf32>
    %cst_41 = arith.constant 9.99999974E-6 : f32
    %228 = vector.broadcast %cst_41 : f32 to vector<16x1xf32>
    %229 = arith.addf %225, %228 : vector<16x1xf32>
    %230 = math.rsqrt %229 : vector<16x1xf32>
    %231 = vector.broadcast %230 : vector<16x1xf32> to vector<16x32xf32>
    %232 = arith.mulf %227, %231 : vector<16x32xf32>
    %c0_42 = arith.constant 0 : index
    %c0_43 = arith.constant 0 : index
    %233 = vector.load %arg4[%c0_42, %c0_43] : memref<1x32xf32, #tpu.memory_space<vmem>>, vector<1x32xf32>
    %234 = vector.broadcast %233 : vector<1x32xf32> to vector<16x32xf32>
    %235 = arith.mulf %232, %234 : vector<16x32xf32>
    %c0_44 = arith.constant 0 : index
    %c0_45 = arith.constant 0 : index
    %236 = vector.load %arg5[%c0_44, %c0_45] : memref<1x32xf32, #tpu.memory_space<vmem>>, vector<1x32xf32>
    %237 = vector.broadcast %236 : vector<1x32xf32> to vector<16x32xf32>
    %238 = arith.addf %235, %237 : vector<16x32xf32>
    %c0_46 = arith.constant 0 : index
    %c0_47 = arith.constant 0 : index
    %239 = vector.load %arg6[%c0_46, %c0_47] : memref<32x16xf32, #tpu.memory_space<vmem>>, vector<32x16xf32>
    %cst_48 = arith.constant dense<0.000000e+00> : vector<16x16xf32>
    %240 = tpu.matmul %238, %239, %cst_48 {dimension_numbers = #tpu.dot_dimension_numbers<[1], [0], [0], [1], [0, 0, 1, 1], [], []>} : vector<16x32xf32>, vector<32x16xf32>, vector<16x16xf32> -> vector<16x16xf32>
    %c0_49 = arith.constant 0 : index
    %c0_50 = arith.constant 0 : index
    %241 = vector.load %arg7[%c0_49, %c0_50] : memref<1x16xf32, #tpu.memory_space<vmem>>, vector<1x16xf32>
    %242 = vector.broadcast %241 : vector<1x16xf32> to vector<16x16xf32>
    %243 = arith.addf %240, %242 : vector<16x16xf32>
    %244 = vector.extract_strided_slice %243 {offsets = [0, 0], sizes = [2, 16], strides = [1, 1]} : vector<16x16xf32> to vector<2x16xf32>
    %245 = vector.extract_strided_slice %243 {offsets = [2, 0], sizes = [2, 16], strides = [1, 1]} : vector<16x16xf32> to vector<2x16xf32>
    %246 = vector.extract_strided_slice %243 {offsets = [4, 0], sizes = [2, 16], strides = [1, 1]} : vector<16x16xf32> to vector<2x16xf32>
    %247 = vector.extract_strided_slice %243 {offsets = [6, 0], sizes = [2, 16], strides = [1, 1]} : vector<16x16xf32> to vector<2x16xf32>
    %248 = vector.extract_strided_slice %243 {offsets = [8, 0], sizes = [2, 16], strides = [1, 1]} : vector<16x16xf32> to vector<2x16xf32>
    %249 = vector.extract_strided_slice %243 {offsets = [10, 0], sizes = [2, 16], strides = [1, 1]} : vector<16x16xf32> to vector<2x16xf32>
    %250 = vector.extract_strided_slice %243 {offsets = [12, 0], sizes = [2, 16], strides = [1, 1]} : vector<16x16xf32> to vector<2x16xf32>
    %251 = vector.extract_strided_slice %243 {offsets = [14, 0], sizes = [2, 16], strides = [1, 1]} : vector<16x16xf32> to vector<2x16xf32>
    %252 = tpu.concatenate %244, %245, %246, %247, %248, %249, %250, %251 in 1 : vector<2x16xf32>, vector<2x16xf32>, vector<2x16xf32>, vector<2x16xf32>, vector<2x16xf32>, vector<2x16xf32>, vector<2x16xf32>, vector<2x16xf32> -> vector<2x128xf32>
    %c0_51 = arith.constant 0 : index
    %c0_52 = arith.constant 0 : index
    %253 = vector.load %arg8[%c0_51, %c0_52] : memref<2x128xf32, #tpu.memory_space<vmem>>, vector<2x128xf32>
    tpu.vector_store %arg8[%c0_51, %c0_52], %252 {strides = array<i32>} : memref<2x128xf32, #tpu.memory_space<vmem>>, vector<2x128xf32>,
    return
  }
}

</mosaic_0001>

<bundles_post_ra>
// kernel: decompressor_forward.1
= control target key start
LH: loop header
LB: loop body
LE: loop exit
PB: predicated region body
PF: predicated region fallthrough
CT: control target
= control target key end

     0   :  { %vm42_vm0 = vcmask 261120   ;;  %vm548_vm13 = vcmask 1041408   ;;  %vm550_vm14 = vcmask 1043456   ;;  %s832_s13 = smov 16   ;;  %s833_s14 = smov 48   ;;  %s1020_s1 = inlined_call_operand.vmem [shape: f32[32,128], index: 1, kind: input, shape index: {}]   ;;  %s1021_s3 = inlined_call_operand.vmem [shape: f32[1,128], index: 3, kind: input, shape index: {}]   ;;  %s1022_s0 = inlined_call_operand.vmem [shape: f32[2,32], index: 0, kind: input, shape index: {}]   ;;  %s1023_s2 = inlined_call_operand.vmem [shape: f32[32,128], index: 2, kind: input, shape index: {}]   ;;  %s1024_s4 = inlined_call_operand.vmem [shape: f32[1,32], index: 4, kind: input, shape index: {}]   ;;  %s1025_s5 = inlined_call_operand.vmem [shape: f32[1,32], index: 5, kind: input, shape index: {}]   ;;  %s1026_s6 = inlined_call_operand.vmem [shape: f32[32,16], index: 6, kind: input, shape index: {}]   ;;  %s1027_s7 = inlined_call_operand.vmem [shape: f32[1,16], index: 7, kind: input, shape index: {}]   ;;  %s1028_s8 = inlined_call_operand.vmem [shape: f32[2,128], index: 8, kind: output, shape index: {}]  }
   0x1   :  { %v41_v0 = vld [vmem:[%s1020_s1 + $0x18] sm:$0xff]  ;;  %v40_v1 = vld [vmem:[%s1020_s1 + $0x10] sm:$0xff]  ;;  %v39_v2 = vld [vmem:[%s1020_s1 + $0x8] sm:$0xff]  ;;  %s834_s15 = smov 80  }
   0x2   :  { %58 = vmatpush.msra.mxu1 %v41_v0  ;;  %v38_v3 = vld [vmem:[%s1020_s1] sm:$0xff]  ;;  %s828_s1 = smov 64   ;;  %v36_v25 = vld [vmem:[%s1023_s2 + $0x18] sm:$0xff]  ;;  %v35_v26 = vld [vmem:[%s1023_s2 + $0x10] sm:$0xff] }
   0x3   :  { %v37_v4 = vld [vmem:[%s1022_s0] sm:$0x3]  ;;  %s829_s0 = smov 32   ;;  %180 = vmatpush.msra.mxu2 %v36_v25  ;;  %v34_v27 = vld [vmem:[%s1023_s2 + $0x8] sm:$0xff]  ;;  %242 = vmatpush.msra.mxu3 %v36_v25 }
   0x4   :  { %59 = vmatpush.msra.mxu1 %v40_v1  ;;  %v900_v5 = vld [vmem:[%s1021_s3] ss:$0 sm:$0xff]  ;;  %s830_s3 = smov 96   ;;  %304 = vmatpush.msra.mxu0 %v36_v25 }
   0x5   :  { %181 = vmatpush.msra.mxu2 %v35_v26  ;;  %v33_v28 = vld [vmem:[%s1023_s2] sm:$0xff]  ;;  %243 = vmatpush.msra.mxu3 %v35_v26 }
   0x6   :  { %60 = vmatpush.msra.mxu1 %v39_v2  ;;  %305 = vmatpush.msra.mxu0 %v35_v26 }
   0x7   :  { %182 = vmatpush.msra.mxu2 %v34_v27  ;;  %244 = vmatpush.msra.mxu3 %v34_v27 }
   0x8   :  { %61 = vmatpush.msra.mxu1 %v38_v3  ;;  %306 = vmatpush.msra.mxu0 %v34_v27 }
   0x9   :  { %728 = vmatmul.msk.f32.vlgmr.msra.gmra.mxu1 %vm42_vm0, %v37_v4  ;;  %183 = vmatpush.msra.mxu2 %v33_v28 }
   0xa   :  { %114 = vmatpush.msrb.mxu1 %v36_v25  ;;  %245 = vmatpush.msra.mxu3 %v33_v28 }
   0xb   :  { %307 = vmatpush.msra.mxu0 %v33_v28  ;;  %428 = vmatpush.msrb.mxu2 %v36_v25 }
   0xc   :  { %115 = vmatpush.msrb.mxu1 %v35_v26  ;;  %490 = vmatpush.msrb.mxu3 %v36_v25 }
   0xd   :  { %429 = vmatpush.msrb.mxu2 %v35_v26 }
   0xe   :  { %116 = vmatpush.msrb.mxu1 %v34_v27  ;;  %491 = vmatpush.msrb.mxu3 %v35_v26 }
   0xf   :  { %430 = vmatpush.msrb.mxu2 %v34_v27 }
  0x10   :  { %117 = vmatpush.msrb.mxu1 %v33_v28  ;;  %492 = vmatpush.msrb.mxu3 %v34_v27 }
  0x11   :  { %431 = vmatpush.msrb.mxu2 %v33_v28 }
  0x12   :  { %366 = vmatpush.msra.mxu1 %v36_v25  ;;  %493 = vmatpush.msrb.mxu3 %v33_v28 }
  0x14   :  { %367 = vmatpush.msra.mxu1 %v35_v26 }
  0x16   :  { %368 = vmatpush.msra.mxu1 %v34_v27 }
  0x18   :  { %369 = vmatpush.msra.mxu1 %v33_v28 }
  0x86   :  { %v63_v6 = vpop.f32.mrf.mxu1 }
  0x87   :  { %v64_v7 = vadd.f32 %v900_v5, %v63_v6 }
  0x89   :  { %758 = vtanh.f32 %v64_v7  ;;  %v729_v9 = vmul.f32 -1.442695, %v64_v7 }
  0x8b   :  { %760 = vpow2.f32 %v729_v9 }
  0x8f   :  { %v759_v8 = vpop.eup %758 }
  0x90   :  { %87 = vrot.lane.b32.xlu0 %v759_v8, %s828_s1 }
  0x91   :  { %v761_v10 = vpop.eup %760 }
  0x92   :  { %v69_v11 = vadd.f32 1.0, %v761_v10 }
  0x94   :  { %762 = vrcp.f32 %v69_v11  ;;  %v81_v17 = vand.u32 2147483648, %v69_v11  ;;  %vm75_vm2 = vweird.f32 %v69_v11  ;;  %v79_v18 = vand.u32 2147483647, %v69_v11 }
  0x96   :  { %v82_v20 = vor.u32 1.1754944e-38, %v81_v17  ;;  %vm80_vm4 = vcmp.eq.f32.partialorder %v79_v18, 8.507059e+37 }
  0x9a   :  { %v763_v12 = vpop.eup %762 }
  0x9b   :  { %v71_v13 = vmul.f32 %v763_v12, %v69_v11  ;;  %vm76_vm1 = vweird.f32 %v763_v12 }
  0x9c   :  { %vm77_vm3 = vmor %vm75_vm2, %vm76_vm1 }
  0x9d   :  { %v72_v14 = vsub.f32 1.0, %v71_v13 }
  0x9f   :  { %v73_v15 = vmul.f32 %v763_v12, %v72_v14 }
  0xa1   :  { %v74_v16 = vadd.f32 %v763_v12, %v73_v15 }
  0xa3   :  { %v78_v19 = vsel %vm77_vm3, %v763_v12, %v74_v16 }
  0xa4   :  { %v83_v22 = vsel %vm80_vm4, %v82_v20, %v78_v19  ;;  %vm552_vm4 = vcmask 1045504  }
 0x102   :  { %v88_v21 = vpop.permute.xlu0 %87 }
 0x103   :  { %v90_v23 = vmul.f32 %v88_v21, %v83_v22 }
 0x105   :  { %764 = vtanh.f32 %v90_v23  ;;  %143 = vrot.lane.b32.xlu2 %v90_v23, %s829_s0 }
 0x10b   :  { %v765_v24 = vpop.eup %764 }
 0x10c   :  { %93 = vrot.lane.b32.xlu0 %v765_v24, %s830_s3 }
 0x15f   :  { %v144_v50 = vpop.permute.xlu2 %143 }
 0x17e   :  { %v94_v29 = vpop.permute.xlu0 %93 }
 0x17f   :  { %v918_v30 = vmul.f32 %v94_v29, %v83_v22 }
 0x181   :  { %98 = vrot.lane.b32.xlu1 %v918_v30, %s829_s0 }
 0x1f3   :  { %v99_v31 = vpop.permute.xlu1 %98 }
 0x1f4   :  { %730 = vmatmul.msk.f32.vlgmr.msrb.gmra.mxu1 %vm42_vm0, %v99_v31 }
 0x271   :  { %v119_v32 = vpop.f32.mrf.mxu1 }
 0x272   :  { %v120_v33 = vadd.f32 %v900_v5, %v119_v32 }
 0x274   :  { %766 = vtanh.f32 %v120_v33  ;;  %v731_v35 = vmul.f32 -1.442695, %v120_v33 }
 0x276   :  { %768 = vpow2.f32 %v731_v35 }
 0x27a   :  { %v767_v34 = vpop.eup %766 }
 0x27b   :  { %148 = vrot.lane.b32.xlu1 %v767_v34, %s828_s1 }
 0x27c   :  { %v769_v36 = vpop.eup %768 }
 0x27d   :  { %v125_v37 = vadd.f32 1.0, %v769_v36 }
 0x27f   :  { %770 = vrcp.f32 %v125_v37  ;;  %v137_v43 = vand.u32 2147483648, %v125_v37  ;;  %vm131_vm6 = vweird.f32 %v125_v37  ;;  %v135_v44 = vand.u32 2147483647, %v125_v37 }
 0x281   :  { %v138_v46 = vor.u32 1.1754944e-38, %v137_v43  ;;  %vm136_vm8 = vcmp.eq.f32.partialorder %v135_v44, 8.507059e+37 }
 0x285   :  { %v771_v38 = vpop.eup %770 }
 0x286   :  { %v127_v39 = vmul.f32 %v771_v38, %v125_v37  ;;  %vm132_vm5 = vweird.f32 %v771_v38 }
 0x287   :  { %vm133_vm7 = vmor %vm131_vm6, %vm132_vm5 }
 0x288   :  { %v128_v40 = vsub.f32 1.0, %v127_v39 }
 0x28a   :  { %v129_v41 = vmul.f32 %v771_v38, %v128_v40 }
 0x28c   :  { %v130_v42 = vadd.f32 %v771_v38, %v129_v41 }
 0x28e   :  { %v134_v45 = vsel %vm133_vm7, %v771_v38, %v130_v42 }
 0x28f   :  { %v139_v48 = vsel %vm136_vm8, %v138_v46, %v134_v45 }
 0x290   :  { %v146_v51 = vmul.f32 %v144_v50, %v139_v48 }
 0x2ed   :  { %v149_v47 = vpop.permute.xlu1 %148 }
 0x2ee   :  { %v151_v49 = vmul.f32 %v149_v47, %v139_v48 }
 0x2f0   :  { %153 = vrot.lane.b32.xlu2 %v151_v49, %s829_s0 }
 0x34a   :  { %v154_v52 = vpop.permute.xlu2 %153 }
 0x34b   :  { %v156_v53 = vadd.f32 %v154_v52, %v146_v51 }
 0x34d   :  { %772 = vtanh.f32 %v156_v53 }
 0x353   :  { %v773_v54 = vpop.eup %772 }
 0x354   :  { %159 = vrot.lane.b32.xlu0 %v773_v54, %s828_s1 }
 0x3c6   :  { %v160_v55 = vpop.permute.xlu0 %159 }
 0x3c7   :  { %v162_v56 = vmul.f32 %v160_v55, %v139_v48 }
 0x3c9   :  { %164 = vrot.lane.b32.xlu1 %v162_v56, %s829_s0  ;;  %v535_v17 = vrot.slane %v162_v56, 6 }
 0x3cb   :  { %v549_v21 = vsel %vm548_vm13, %v918_v30, %v535_v17 }
 0x43b   :  { %v165_v57 = vpop.permute.xlu1 %164 }
 0x43c   :  { %732 = vmatmul.msk.f32.vlgmr.msra.gmra.mxu2 %vm42_vm0, %v165_v57 }
 0x4bf   :  { %v185_v58 = vpop.f32.mrf.mxu2 }
 0x4c0   :  { %v186_v59 = vadd.f32 %v900_v5, %v185_v58 }
 0x4c2   :  { %774 = vtanh.f32 %v186_v59  ;;  %v733_v61 = vmul.f32 -1.442695, %v186_v59 }
 0x4c4   :  { %776 = vpow2.f32 %v733_v61 }
 0x4c8   :  { %v775_v60 = vpop.eup %774 }
 0x4c9   :  { %210 = vrot.lane.b32.xlu2 %v775_v60, %s828_s1 }
 0x4ca   :  { %v777_v62 = vpop.eup %776 }
 0x4cb   :  { %v191_v63 = vadd.f32 1.0, %v777_v62 }
 0x4cd   :  { %778 = vrcp.f32 %v191_v63  ;;  %v203_v6 = vand.u32 2147483648, %v191_v63  ;;  %vm197_vm10 = vweird.f32 %v191_v63  ;;  %v201_v7 = vand.u32 2147483647, %v191_v63 }
 0x4cf   :  { %v204_v9 = vor.u32 1.1754944e-38, %v203_v6  ;;  %vm202_vm12 = vcmp.eq.f32.partialorder %v201_v7, 8.507059e+37 }
 0x4d3   :  { %v779_v0 = vpop.eup %778 }
 0x4d4   :  { %v193_v1 = vmul.f32 %v779_v0, %v191_v63  ;;  %vm198_vm9 = vweird.f32 %v779_v0 }
 0x4d5   :  { %vm199_vm11 = vmor %vm197_vm10, %vm198_vm9 }
 0x4d6   :  { %v194_v2 = vsub.f32 1.0, %v193_v1 }
 0x4d8   :  { %v195_v3 = vmul.f32 %v779_v0, %v194_v2 }
 0x4da   :  { %v196_v4 = vadd.f32 %v779_v0, %v195_v3 }
 0x4dc   :  { %v200_v8 = vsel %vm199_vm11, %v779_v0, %v196_v4 }
 0x4dd   :  { %v205_v11 = vsel %vm202_vm12, %v204_v9, %v200_v8 }
 0x4de   :  { %v208_v13 = vmul.f32 %v205_v11, %v156_v53 }
 0x523   :  { %v211_v10 = vpop.permute.xlu2 %210 }
 0x524   :  { %v213_v12 = vmul.f32 %v211_v10, %v205_v11 }
 0x526   :  { %215 = vrot.lane.b32.xlu0 %v213_v12, %s829_s0 }
 0x598   :  { %v216_v14 = vpop.permute.xlu0 %215 }
 0x599   :  { %v218_v15 = vadd.f32 %v216_v14, %v208_v13 }
 0x59b   :  { %780 = vtanh.f32 %v218_v15 }
 0x5a1   :  { %v781_v16 = vpop.eup %780 }
 0x5a2   :  { %221 = vrot.lane.b32.xlu1 %v781_v16, %s828_s1 }
 0x614   :  { %v222_v18 = vpop.permute.xlu1 %221 }
 0x615   :  { %v224_v19 = vmul.f32 %v222_v18, %v205_v11 }
 0x617   :  { %v537_v20 = vrot.slane %v224_v19, 4  ;;  %226 = vrot.lane.b32.xlu2 %v224_v19, %s829_s0 }
 0x619   :  { %v551_v22 = vsel %vm550_vm14, %v549_v21, %v537_v20 }
 0x671   :  { %v227_v23 = vpop.permute.xlu2 %226 }
 0x672   :  { %734 = vmatmul.msk.f32.vlgmr.msra.gmra.mxu3 %vm42_vm0, %v227_v23 }
 0x6f5   :  { %v247_v24 = vpop.f32.mrf.mxu3 }
 0x6f6   :  { %v248_v25 = vadd.f32 %v900_v5, %v247_v24 }
 0x6f8   :  { %782 = vtanh.f32 %v248_v25  ;;  %v735_v27 = vmul.f32 -1.442695, %v248_v25 }
 0x6fa   :  { %784 = vpow2.f32 %v735_v27 }
 0x6fe   :  { %v783_v26 = vpop.eup %782 }
 0x6ff   :  { %272 = vrot.lane.b32.xlu0 %v783_v26, %s828_s1 }
 0x700   :  { %v785_v28 = vpop.eup %784 }
 0x701   :  { %v253_v29 = vadd.f32 1.0, %v785_v28 }
 0x703   :  { %786 = vrcp.f32 %v253_v29  ;;  %v265_v35 = vand.u32 2147483648, %v253_v29  ;;  %vm259_vm1 = vweird.f32 %v253_v29  ;;  %v263_v36 = vand.u32 2147483647, %v253_v29 }
 0x705   :  { %v266_v38 = vor.u32 1.1754944e-38, %v265_v35  ;;  %vm264_vm3 = vcmp.eq.f32.partialorder %v263_v36, 8.507059e+37 }
 0x709   :  { %v787_v31 = vpop.eup %786 }
 0x70a   :  { %v255_v32 = vmul.f32 %v787_v31, %v253_v29  ;;  %vm260_vm15 = vweird.f32 %v787_v31 }
 0x70b   :  { %vm261_vm2 = vmor %vm259_vm1, %vm260_vm15 }
 0x70c   :  { %v256_v30 = vsub.f32 1.0, %v255_v32 }
 0x70e   :  { %v257_v33 = vmul.f32 %v787_v31, %v256_v30 }
 0x710   :  { %v258_v34 = vadd.f32 %v787_v31, %v257_v33 }
 0x712   :  { %v262_v37 = vsel %vm261_vm2, %v787_v31, %v258_v34 }
 0x713   :  { %v267_v40 = vsel %vm264_vm3, %v266_v38, %v262_v37 }
 0x714   :  { %v270_v42 = vmul.f32 %v267_v40, %v218_v15 }
 0x771   :  { %v273_v39 = vpop.permute.xlu0 %272 }
 0x772   :  { %v275_v41 = vmul.f32 %v273_v39, %v267_v40 }
 0x774   :  { %277 = vrot.lane.b32.xlu1 %v275_v41, %s829_s0 }
 0x7e6   :  { %v278_v43 = vpop.permute.xlu1 %277 }
 0x7e7   :  { %v280_v44 = vadd.f32 %v278_v43, %v270_v42 }
 0x7e9   :  { %788 = vtanh.f32 %v280_v44 }
 0x7ef   :  { %v789_v45 = vpop.eup %788 }
 0x7f0   :  { %283 = vrot.lane.b32.xlu2 %v789_v45, %s828_s1 }
 0x84a   :  { %v284_v46 = vpop.permute.xlu2 %283 }
 0x84b   :  { %v286_v47 = vmul.f32 %v284_v46, %v267_v40 }
 0x84d   :  { %v539_v48 = vrot.slane %v286_v47, 2  ;;  %288 = vrot.lane.b32.xlu0 %v286_v47, %s829_s0 }
 0x84f   :  { %v944_v49 = vsel %vm552_vm4, %v551_v22, %v539_v48 }
 0x8bf   :  { %v289_v50 = vpop.permute.xlu0 %288 }
 0x8c0   :  { %736 = vmatmul.msk.f32.vlgmr.msra.gmra.mxu0 %vm42_vm0, %v289_v50 }
 0x93d   :  { %v309_v51 = vpop.f32.mrf.mxu0 }
 0x93e   :  { %v310_v52 = vadd.f32 %v900_v5, %v309_v51 }
 0x940   :  { %790 = vtanh.f32 %v310_v52  ;;  %v737_v54 = vmul.f32 -1.442695, %v310_v52 }
 0x942   :  { %792 = vpow2.f32 %v737_v54 }
 0x946   :  { %v791_v53 = vpop.eup %790 }
 0x947   :  { %334 = vrot.lane.b32.xlu1 %v791_v53, %s828_s1 }
 0x948   :  { %v793_v55 = vpop.eup %792 }
 0x949   :  { %v315_v56 = vadd.f32 1.0, %v793_v55 }
 0x94b   :  { %794 = vrcp.f32 %v315_v56  ;;  %v327_v62 = vand.u32 2147483648, %v315_v56  ;;  %vm321_vm6 = vweird.f32 %v315_v56  ;;  %v325_v63 = vand.u32 2147483647, %v315_v56 }
 0x94d   :  { %v328_v1 = vor.u32 1.1754944e-38, %v327_v62  ;;  %vm326_vm8 = vcmp.eq.f32.partialorder %v325_v63, 8.507059e+37 }
 0x951   :  { %v795_v57 = vpop.eup %794 }
 0x952   :  { %v317_v58 = vmul.f32 %v795_v57, %v315_v56  ;;  %vm322_vm5 = vweird.f32 %v795_v57 }
 0x953   :  { %vm323_vm7 = vmor %vm321_vm6, %vm322_vm5 }
 0x954   :  { %v318_v59 = vsub.f32 1.0, %v317_v58 }
 0x956   :  { %v319_v60 = vmul.f32 %v795_v57, %v318_v59 }
 0x958   :  { %v320_v61 = vadd.f32 %v795_v57, %v319_v60 }
 0x95a   :  { %v324_v0 = vsel %vm323_vm7, %v795_v57, %v320_v61 }
 0x95b   :  { %v329_v3 = vsel %vm326_vm8, %v328_v1, %v324_v0 }
 0x95c   :  { %v332_v6 = vmul.f32 %v329_v3, %v280_v44 }
 0x9b9   :  { %v335_v2 = vpop.permute.xlu1 %334 }
 0x9ba   :  { %v337_v4 = vmul.f32 %v335_v2, %v329_v3 }
 0x9bc   :  { %339 = vrot.lane.b32.xlu2 %v337_v4, %s829_s0 }
 0xa16   :  { %v340_v7 = vpop.permute.xlu2 %339 }
 0xa17   :  { %v342_v8 = vadd.f32 %v340_v7, %v332_v6 }
 0xa19   :  { %796 = vtanh.f32 %v342_v8 }
 0xa1f   :  { %v797_v9 = vpop.eup %796 }
 0xa20   :  { %345 = vrot.lane.b32.xlu0 %v797_v9, %s828_s1 }
 0xa92   :  { %v346_v10 = vpop.permute.xlu0 %345 }
 0xa93   :  { %v951_v11 = vmul.f32 %v346_v10, %v329_v3 }
 0xa95   :  { %350 = vrot.lane.b32.xlu1 %v951_v11, %s829_s0 }
 0xb07   :  { %v351_v12 = vpop.permute.xlu1 %350 }
 0xb08   :  { %738 = vmatmul.msk.f32.vlgmr.msra.gmra.mxu1 %vm42_vm0, %v351_v12 }
 0xb85   :  { %v371_v13 = vpop.f32.mrf.mxu1 }
 0xb86   :  { %v372_v14 = vadd.f32 %v900_v5, %v371_v13 }
 0xb88   :  { %798 = vtanh.f32 %v372_v14  ;;  %v739_v16 = vmul.f32 -1.442695, %v372_v14 }
 0xb8a   :  { %800 = vpow2.f32 %v739_v16 }
 0xb8e   :  { %v799_v15 = vpop.eup %798 }
 0xb8f   :  { %396 = vrot.lane.b32.xlu2 %v799_v15, %s828_s1 }
 0xb90   :  { %v801_v17 = vpop.eup %800 }
 0xb91   :  { %v377_v18 = vadd.f32 1.0, %v801_v17 }
 0xb93   :  { %802 = vrcp.f32 %v377_v18  ;;  %v389_v24 = vand.u32 2147483648, %v377_v18  ;;  %vm383_vm10 = vweird.f32 %v377_v18  ;;  %v387_v25 = vand.u32 2147483647, %v377_v18 }
 0xb95   :  { %v390_v27 = vor.u32 1.1754944e-38, %v389_v24  ;;  %vm388_vm12 = vcmp.eq.f32.partialorder %v387_v25, 8.507059e+37 }
 0xb99   :  { %v803_v19 = vpop.eup %802 }
 0xb9a   :  { %v379_v20 = vmul.f32 %v803_v19, %v377_v18  ;;  %vm384_vm9 = vweird.f32 %v803_v19 }
 0xb9b   :  { %vm385_vm11 = vmor %vm383_vm10, %vm384_vm9 }
 0xb9c   :  { %v380_v21 = vsub.f32 1.0, %v379_v20 }
 0xb9e   :  { %v381_v22 = vmul.f32 %v803_v19, %v380_v21 }
 0xba0   :  { %v382_v23 = vadd.f32 %v803_v19, %v381_v22 }
 0xba2   :  { %v386_v26 = vsel %vm385_vm11, %v803_v19, %v382_v23 }
 0xba3   :  { %v391_v29 = vsel %vm388_vm12, %v390_v27, %v386_v26 }
 0xba4   :  { %v394_v32 = vmul.f32 %v391_v29, %v342_v8 }
 0xbe9   :  { %v397_v28 = vpop.permute.xlu2 %396 }
 0xbea   :  { %v399_v31 = vmul.f32 %v397_v28, %v391_v29 }
 0xbec   :  { %401 = vrot.lane.b32.xlu0 %v399_v31, %s829_s0 }
 0xc5e   :  { %v402_v30 = vpop.permute.xlu0 %401 }
 0xc5f   :  { %v404_v33 = vadd.f32 %v402_v30, %v394_v32  ;;  %v831_v30 = vmov 32.0  }
 0xc61   :  { %804 = vtanh.f32 %v404_v33 }
 0xc67   :  { %v805_v34 = vpop.eup %804 }
 0xc68   :  { %407 = vrot.lane.b32.xlu1 %v805_v34, %s828_s1 }
 0xcda   :  { %v408_v35 = vpop.permute.xlu1 %407 }
 0xcdb   :  { %v410_v36 = vmul.f32 %v408_v35, %v391_v29 }
 0xcdd   :  { %412 = vrot.lane.b32.xlu2 %v410_v36, %s829_s0  ;;  %v541_v61 = vrot.slane %v410_v36, 6 }
 0xcdf   :  { %v554_v1 = vsel %vm548_vm13, %v951_v11, %v541_v61  ;;  %v643_v61 = vld [vmem:[%s1026_s6 + $0x18] sm:$0xff] }
 0xce0   :  { %670 = vmatpush.msrb.mxu0 %v643_v61 }
 0xd37   :  { %v413_v37 = vpop.permute.xlu2 %412 }
 0xd38   :  { %740 = vmatmul.msk.f32.vlgmr.msrb.gmra.mxu2 %vm42_vm0, %v413_v37 }
 0xdbb   :  { %v433_v38 = vpop.f32.mrf.mxu2 }
 0xdbc   :  { %v434_v39 = vadd.f32 %v900_v5, %v433_v38 }
 0xdbe   :  { %806 = vtanh.f32 %v434_v39  ;;  %v741_v41 = vmul.f32 -1.442695, %v434_v39 }
 0xdc0   :  { %808 = vpow2.f32 %v741_v41 }
 0xdc4   :  { %v807_v40 = vpop.eup %806 }
 0xdc5   :  { %458 = vrot.lane.b32.xlu0 %v807_v40, %s828_s1 }
 0xdc6   :  { %v809_v42 = vpop.eup %808 }
 0xdc7   :  { %v439_v43 = vadd.f32 1.0, %v809_v42 }
 0xdc9   :  { %810 = vrcp.f32 %v439_v43  ;;  %v451_v50 = vand.u32 2147483648, %v439_v43  ;;  %vm445_vm1 = vweird.f32 %v439_v43  ;;  %v449_v51 = vand.u32 2147483647, %v439_v43 }
 0xdcb   :  { %v452_v53 = vor.u32 1.1754944e-38, %v451_v50  ;;  %vm450_vm3 = vcmp.eq.f32.partialorder %v449_v51, 8.507059e+37  ;;  %v755_v50 = vld [vmem:[%s1024_s4] ss:$0 sm:$0xff] }
 0xdcf   :  { %v811_v44 = vpop.eup %810 }
 0xdd0   :  { %v441_v45 = vmul.f32 %v811_v44, %v439_v43  ;;  %vm446_vm15 = vweird.f32 %v811_v44 }
 0xdd1   :  { %vm447_vm2 = vmor %vm445_vm1, %vm446_vm15  ;;  %vm710_vm15 = vcmask 130048   ;;  %vm713_vm1 = vcmask 392192  }
 0xdd2   :  { %v442_v46 = vsub.f32 1.0, %v441_v45 }
 0xdd4   :  { %v443_v47 = vmul.f32 %v811_v44, %v442_v46 }
 0xdd6   :  { %v444_v48 = vadd.f32 %v811_v44, %v443_v47 }
 0xdd8   :  { %v448_v52 = vsel %vm447_vm2, %v811_v44, %v444_v48  ;;  %vm715_vm2 = vcmask 523264  }
 0xdd9   :  { %v453_v55 = vsel %vm450_vm3, %v452_v53, %v448_v52  ;;  %vm717_vm3 = vcmask 654336  }
 0xdda   :  { %v456_v57 = vmul.f32 %v453_v55, %v404_v33 }
 0xe37   :  { %v459_v54 = vpop.permute.xlu0 %458 }
 0xe38   :  { %v461_v56 = vmul.f32 %v459_v54, %v453_v55  ;;  %v756_v54 = vld [vmem:[%s1025_s5] ss:$0 sm:$0xff] }
 0xe3a   :  { %463 = vrot.lane.b32.xlu1 %v461_v56, %s829_s0 }
 0xeac   :  { %v464_v58 = vpop.permute.xlu1 %463 }
 0xead   :  { %v466_v59 = vadd.f32 %v464_v58, %v456_v57 }
 0xeaf   :  { %812 = vtanh.f32 %v466_v59 }
 0xeb5   :  { %v813_v60 = vpop.eup %812 }
 0xeb6   :  { %469 = vrot.lane.b32.xlu2 %v813_v60, %s828_s1 }
 0xf10   :  { %v470_v62 = vpop.permute.xlu2 %469 }
 0xf11   :  { %v472_v63 = vmul.f32 %v470_v62, %v453_v55  ;;  %v642_v62 = vld [vmem:[%s1026_s6 + $0x10] sm:$0xff] }
 0xf12   :  { %671 = vmatpush.msrb.mxu0 %v642_v62 }
 0xf13   :  { %v543_v0 = vrot.slane %v472_v63, 4  ;;  %474 = vrot.lane.b32.xlu0 %v472_v63, %s829_s0 }
 0xf15   :  { %v555_v2 = vsel %vm550_vm14, %v554_v1, %v543_v0  ;;  %v641_v0 = vld [vmem:[%s1026_s6 + $0x8] sm:$0xff] }
 0xf16   :  { %672 = vmatpush.msrb.mxu0 %v641_v0 }
 0xf85   :  { %v475_v3 = vpop.permute.xlu0 %474 }
 0xf86   :  { %742 = vmatmul.msk.f32.vlgmr.msrb.gmra.mxu3 %vm42_vm0, %v475_v3  ;;  %v640_v3 = vld [vmem:[%s1026_s6] sm:$0xff] }
 0xf87   :  { %673 = vmatpush.msrb.mxu0 %v640_v3 }
0x1009   :  { %v495_v4 = vpop.f32.mrf.mxu3 }
0x100a   :  { %v496_v6 = vadd.f32 %v900_v5, %v495_v4 }
0x100c   :  { %814 = vtanh.f32 %v496_v6  ;;  %v743_v8 = vmul.f32 -1.442695, %v496_v6 }
0x100e   :  { %816 = vpow2.f32 %v743_v8 }
0x1012   :  { %v815_v7 = vpop.eup %814 }
0x1013   :  { %520 = vrot.lane.b32.xlu1 %v815_v7, %s828_s1 }
0x1014   :  { %v817_v9 = vpop.eup %816 }
0x1015   :  { %v501_v10 = vadd.f32 1.0, %v817_v9 }
0x1017   :  { %818 = vrcp.f32 %v501_v10  ;;  %v513_v16 = vand.u32 2147483648, %v501_v10  ;;  %vm507_vm14 = vweird.f32 %v501_v10  ;;  %v511_v5 = vand.u32 2147483647, %v501_v10 }
0x1019   :  { %v514_v18 = vor.u32 1.1754944e-38, %v513_v16  ;;  %vm512_vm6 = vcmp.eq.f32.partialorder %v511_v5, 8.507059e+37 }
0x101b   :  { %559 = vrot.lane.b32.xlu1 %v944_v49, %s829_s0 }
0x101d   :  { %v819_v11 = vpop.eup %818 }
0x101e   :  { %v503_v12 = vmul.f32 %v819_v11, %v501_v10  ;;  %vm508_vm13 = vweird.f32 %v819_v11 }
0x101f   :  { %vm509_vm5 = vmor %vm507_vm14, %vm508_vm13  ;;  %vm719_vm13 = vcmask 785408   ;;  %vm721_vm14 = vcmask 916480  }
0x1020   :  { %v504_v13 = vsub.f32 1.0, %v503_v12 }
0x1022   :  { %v505_v14 = vmul.f32 %v819_v11, %v504_v13 }
0x1024   :  { %v506_v15 = vadd.f32 %v819_v11, %v505_v14 }
0x1026   :  { %v510_v17 = vsel %vm509_vm5, %v819_v11, %v506_v15 }
0x1027   :  { %v515_v20 = vsel %vm512_vm6, %v514_v18, %v510_v17 }
0x1028   :  { %v518_v22 = vmul.f32 %v515_v20, %v466_v59 }
0x1085   :  { %v521_v19 = vpop.permute.xlu1 %520 }
0x1086   :  { %v523_v21 = vmul.f32 %v521_v19, %v515_v20 }
0x1088   :  { %525 = vrot.lane.b32.xlu2 %v523_v21, %s829_s0 }
0x108d   :  { %v560_v26 = vpop.permute.xlu1 %559 }
0x108e   :  { %v565_v27 = vsel %vm42_vm0, %v560_v26, 0.0 }
0x10e2   :  { %v526_v23 = vpop.permute.xlu2 %525 }
0x10e3   :  { %v528_v24 = vadd.f32 %v526_v23, %v518_v22 }
0x10e5   :  { %820 = vtanh.f32 %v528_v24 }
0x10e6   :  { %822 = vrcp.f32 %v831_v30 }
0x10eb   :  { %v821_v25 = vpop.eup %820 }
0x10ec   :  { %531 = vrot.lane.b32.xlu0 %v821_v25, %s828_s1  ;;  %v823_v33 = vpop.eup %822  ;;  %v757_v25 = vld [vmem:[%s1027_s7] ss:$0 sm:$0xff]  ;;  %s835_s7 = smov 112  }
0x10ed   :  { %v572_v34 = vmul.f32 32.0, %v823_v33  ;;  %vm576_vm7 = vweird.f32 %v823_v33 }
0x10ef   :  { %v573_v35 = vsub.f32 1.0, %v572_v34 }
0x10f1   :  { %v574_v36 = vmul.f32 %v823_v33, %v573_v35 }
0x10f3   :  { %v575_v37 = vadd.f32 %v823_v33, %v574_v36 }
0x10f5   :  { %v577_v38 = vsel %vm576_vm7, %v823_v33, %v575_v37 }
0x1116   :  { %566 = vadd.xlane.f32.xlu0 %v565_v27 }
0x115e   :  { %v532_v28 = vpop.permute.xlu0 %531 }
0x115f   :  { %v534_v29 = vmul.f32 %v532_v28, %v515_v20 }
0x1161   :  { %v546_v31 = vrot.slane %v534_v29, 2 }
0x1163   :  { %v556_v32 = vsel %vm552_vm4, %v555_v2, %v546_v31 }
0x1164   :  { %561 = vrot.lane.b32.xlu2 %v556_v32, %s829_s0 }
0x1189   :  { %v567_v39 = vpop.xlane.xlu0 %566 }
0x118a   :  { %v578_v40 = vmul.f32 %v577_v38, %v567_v39 }
0x118c   :  { %v580_v41 = vsub.f32 %v944_v49, %v578_v40 }
0x118e   :  { %v582_v42 = vmul.f32 %v580_v41, %v580_v41 }
0x1190   :  { %586 = vrot.lane.b32.xlu2 %v582_v42, %s829_s0 }
0x11be   :  { %v562_v43 = vpop.permute.xlu2 %561 }
0x11bf   :  { %v568_v44 = vsel %vm42_vm0, %v562_v43, 0.0 }
0x11c0   :  { %569 = vadd.xlane.f32.xlu1 %v568_v44 }
0x11d9   :  { %627 = vrot.lane.b32.xlu1 %v755_v50, %s830_s3 }
0x11ea   :  { %v587_v49 = vpop.permute.xlu2 %586 }
0x11eb   :  { %v592_v51 = vsel %vm42_vm0, %v587_v49, 0.0 }
0x1233   :  { %v570_v45 = vpop.xlane.xlu1 %569 }
0x1234   :  { %v579_v46 = vmul.f32 %v577_v38, %v570_v45 }
0x1236   :  { %v581_v47 = vsub.f32 %v556_v32, %v579_v46 }
0x1238   :  { %v583_v48 = vmul.f32 %v581_v47, %v581_v47 }
0x123a   :  { %588 = vrot.lane.b32.xlu2 %v583_v48, %s829_s0 }
0x124b   :  { %v628_v13 = vpop.permute.xlu1 %627 }
0x1263   :  { %593 = vadd.xlane.f32.xlu2 %v592_v51 }
0x1294   :  { %v589_v52 = vpop.permute.xlu2 %588 }
0x1295   :  { %v595_v53 = vsel %vm42_vm0, %v589_v52, 0.0 }
0x1296   :  { %596 = vadd.xlane.f32.xlu0 %v595_v53 }
0x12aa   :  { %635 = vrot.lane.b32.xlu0 %v756_v54, %s830_s3 }
0x12d6   :  { %v594_v55 = vpop.xlane.xlu2 %593 }
0x12d7   :  { %v598_v56 = vmul.f32 %v594_v55, %v577_v38 }
0x12d9   :  { %v600_v57 = vadd.f32 1e-05, %v598_v56 }
0x12db   :  { %824 = vrsqrt.f32 %v600_v57  ;;  %vm608_vm8 = vweird.f32 %v600_v57 }
0x12e1   :  { %v825_v58 = vpop.eup %824 }
0x12e2   :  { %v603_v59 = vmul.f32 %v825_v58, %v600_v57  ;;  %vm609_vm4 = vweird.f32 %v825_v58 }
0x12e3   :  { %vm610_vm9 = vmor %vm608_vm8, %vm609_vm4 }
0x12e4   :  { %v604_v60 = vmul.f32 %v825_v58, %v603_v59 }
0x12e6   :  { %v605_v63 = vmul.f32 0.5, %v604_v60 }
0x12e8   :  { %v606_v4 = vsub.f32 1.5, %v605_v63 }
0x12ea   :  { %v607_v7 = vmul.f32 %v825_v58, %v606_v4 }
0x12ec   :  { %v611_v9 = vsel %vm610_vm9, %v825_v58, %v607_v7 }
0x12ed   :  { %v622_v11 = vmul.f32 %v611_v9, %v580_v41 }
0x12ef   :  { %v630_v15 = vmul.f32 %v628_v13, %v622_v11 }
0x1309   :  { %v597_v1 = vpop.xlane.xlu0 %596 }
0x130a   :  { %v599_v2 = vmul.f32 %v597_v1, %v577_v38 }
0x130c   :  { %v601_v6 = vadd.f32 1e-05, %v599_v2 }
0x130e   :  { %826 = vrsqrt.f32 %v601_v6  ;;  %vm618_vm11 = vweird.f32 %v601_v6 }
0x1314   :  { %v827_v8 = vpop.eup %826 }
0x1315   :  { %v613_v10 = vmul.f32 %v827_v8, %v601_v6  ;;  %vm619_vm10 = vweird.f32 %v827_v8 }
0x1316   :  { %vm620_vm12 = vmor %vm618_vm11, %vm619_vm10 }
0x1317   :  { %v614_v12 = vmul.f32 %v827_v8, %v613_v10 }
0x1319   :  { %v615_v14 = vmul.f32 0.5, %v614_v12 }
0x131b   :  { %v616_v16 = vsub.f32 1.5, %v615_v14 }
0x131c   :  { %v636_v5 = vpop.permute.xlu0 %635 }
0x131d   :  { %v617_v17 = vmul.f32 %v827_v8, %v616_v16  ;;  %v638_v18 = vadd.f32 %v636_v5, %v630_v15 }
0x131f   :  { %v621_v19 = vsel %vm620_vm12, %v827_v8, %v617_v17  ;;  %650 = vrot.lane.b32.xlu2 %v638_v18, %s829_s0 }
0x1320   :  { %v623_v20 = vmul.f32 %v621_v19, %v581_v47 }
0x1322   :  { %v631_v21 = vmul.f32 %v628_v13, %v623_v20 }
0x1324   :  { %v639_v22 = vadd.f32 %v636_v5, %v631_v21 }
0x1326   :  { %652 = vrot.lane.b32.xlu1 %v639_v22, %s829_s0 }
0x1379   :  { %v651_v23 = vpop.permute.xlu2 %650 }
0x137a   :  { %744 = vmatmul.msk.f32.vlgmr.msrb.gmra.mxu0 %vm42_vm0, %v651_v23 }
0x1398   :  { %v653_v24 = vpop.permute.xlu1 %652 }
0x1399   :  { %745 = vmatmul.msk.f32.gmra.mxu0 %vm42_vm0, %v653_v24 }
0x13f7   :  { %v675_v26 = vpop.f32.mrf.mxu0 }
0x13f8   :  { %v676_v27 = vadd.f32 %v757_v25, %v675_v26 }
0x13fa   :  { %v686_v28 = vrot.slane %v676_v27, 4  ;;  %v682_v29 = vrot.slane %v676_v27, 2  ;;  %v690_v31 = vrot.slane %v676_v27, 6 }
0x13fc   :  { %687 = vrot.lane.b32.xlu1 %v686_v28, %s829_s0  ;;  %683 = vrot.lane.b32.xlu0 %v682_v29, %s832_s13 }
0x1404   :  { %691 = vrot.lane.b32.xlu0 %v690_v31, %s833_s14 }
0x1416   :  { %v678_v32 = vpop.f32.mrf.mxu0 }
0x1417   :  { %v679_v30 = vadd.f32 %v757_v25, %v678_v32 }
0x1419   :  { %695 = vrot.lane.b32.xlu2 %v679_v30, %s828_s1  ;;  %v698_v33 = vrot.slane %v679_v30, 2  ;;  %v702_v34 = vrot.slane %v679_v30, 4  ;;  %v706_v35 = vrot.slane %v679_v30, 6 }
0x141b   :  { %699 = vrot.lane.b32.xlu1 %v698_v33, %s834_s15  ;;  %703 = vrot.lane.b32.xlu0 %v702_v34, %s830_s3 }
0x1421   :  { %707 = vrot.lane.b32.xlu2 %v706_v35, %s835_s7 }
0x146e   :  { %v684_v36 = vpop.permute.xlu0 %683  ;;  %v688_v37 = vpop.permute.xlu1 %687 }
0x146f   :  { %v711_v40 = vsel %vm710_vm15, %v676_v27, %v684_v36 }
0x1470   :  { %v712_v41 = vsel %vm42_vm0, %v711_v40, %v688_v37 }
0x1473   :  { %v696_v38 = vpop.permute.xlu2 %695 }
0x1476   :  { %v692_v39 = vpop.permute.xlu0 %691 }
0x1477   :  { %v714_v42 = vsel %vm713_vm1, %v712_v41, %v692_v39 }
0x1478   :  { %v716_v44 = vsel %vm715_vm2, %v714_v42, %v696_v38 }
0x147b   :  { %v708_v47 = vpop.permute.xlu2 %707 }
0x148d   :  { %v700_v43 = vpop.permute.xlu1 %699  ;;  %v704_v45 = vpop.permute.xlu0 %703 }
0x148e   :  { %v718_v46 = vsel %vm717_vm3, %v716_v44, %v700_v43 }
0x148f   :  { %v720_v48 = vsel %vm719_vm13, %v718_v46, %v704_v45 }
0x1490   :  { %v722_v50 = vsel %vm721_vm14, %v720_v48, %v708_v47 }
0x1491   :  { %723 = vst [vmem:[%s1028_s8] sm:$0x3] %v722_v50 }

</bundles_post_ra>
